<compile_context>
chip_gen: v7x
topology: tpu7x:2x2x1
jax: 0.10.0
libtpu: 0.0.40
codegen_flags: <defaults>
</compile_context>

<pallas_src>
import functools

import jax
import jax.numpy as jnp
from jax import lax
from jax.experimental import pallas as pl
from jax.experimental.pallas import tpu as pltpu

LAMBDA_ = 0.2
EPS = 1e-12  # F.normalize default eps

_VMEM_PLAN_BYTES = 32 * 1024 * 1024    # tile-sizing budget; fits every chip
_VMEM_LIMIT_BYTES = 48 * 1024 * 1024   # scoped-VMEM limit (covers v5e's 16 MiB default)
_SMALL_PATH_BYTES = 4 * 1024 * 1024    # single-tile fast-path byte threshold


# --------------------------------------------------------------------------
# Single-tile fast path (whole (N, D) input resident in VMEM).
# --------------------------------------------------------------------------
def _mfi_loss_small_kernel(t_ref, out_ref):
    t = t_ref[...].astype(jnp.float32)
    n, d = t.shape

    # Row-wise L2 normalize: x / max(||x||, EPS) == x * rsqrt(max(||x||^2, EPS^2)).
    sumsq = jnp.sum(t * t, axis=-1, keepdims=True)            # (n, 1)
    inv = lax.rsqrt(jnp.maximum(sumsq, EPS * EPS))            # (n, 1)
    t_norm = t * inv
    t_mxu = t_norm.astype(jnp.bfloat16)                       # bf16-native MXU

    # diag(S) straight from the row norms — no (N, N) mask / gather needed.
    diag = sumsq * (inv * inv)                                # (n, 1)
    collapse = jnp.sum((diag - 1.0) ** 2)
    diag_sq = jnp.sum(diag * diag)

    # Gram on the min(N, D) side; transpose folded into dimension numbers.
    contract = (1,) if n <= d else (0,)
    gram = lax.dot_general(
        t_mxu, t_mxu,
        dimension_numbers=((contract, contract), ((), ())),
        preferred_element_type=jnp.float32)

    off_diag = jnp.sum(gram * gram) - diag_sq
    out_ref[0, 0] = collapse + LAMBDA_ * off_diag


def _mfi_loss_small(t_prime):
    out = pl.pallas_call(
        _mfi_loss_small_kernel,
        out_shape=jax.ShapeDtypeStruct((1, 1), jnp.float32),
        in_specs=[pl.BlockSpec(memory_space=pltpu.VMEM)],
        out_specs=pl.BlockSpec(memory_space=pltpu.SMEM),
    )(t_prime)
    return out[0, 0]


# --------------------------------------------------------------------------
# Tiled path for large inputs: 1-D grid over row blocks, (D, D) Gram scratch.
# --------------------------------------------------------------------------
def _mfi_loss_tiled_kernel(n_rows, tile_n, t_ref, out_ref, g_acc, s_acc):
    i = pl.program_id(0)

    @pl.when(i == 0)
    def _init():
        g_acc[...] = jnp.zeros_like(g_acc)
        s_acc[0] = jnp.float32(0.0)   # sum (diag - 1)^2
        s_acc[1] = jnp.float32(0.0)   # sum diag^2

    # Tail mask: the last block may hang off the end of the array; masked rows
    # become exact zero rows (zero Gram / zero diag contribution).
    rows_left = n_rows - i * tile_n
    row_ids = lax.broadcasted_iota(jnp.int32, (tile_n, 1), 0)
    valid = row_ids < rows_left                               # (tile_n, 1)

    t = jnp.where(valid, t_ref[...].astype(jnp.float32), 0.0)  # (tile_n, D)
    sumsq = jnp.sum(t * t, axis=-1, keepdims=True)             # (tile_n, 1)
    inv = lax.rsqrt(jnp.maximum(sumsq, EPS * EPS))
    t_norm = (t * inv).astype(jnp.bfloat16)                    # bf16-native MXU

    # G += block^T @ block — contraction over the (large) row dimension;
    # f32 accumulation, no explicit transpose materialized.
    g_acc[...] += lax.dot_general(
        t_norm, t_norm,
        dimension_numbers=(((0,), (0,)), ((), ())),
        preferred_element_type=jnp.float32)

    # diag(S) contributions from the (f32) row norms; masked rows give 0.
    diag = sumsq * (inv * inv)                                 # (tile_n, 1)
    s_acc[0] += jnp.sum(jnp.where(valid, (diag - 1.0) ** 2, 0.0))
    s_acc[1] += jnp.sum(diag * diag)

    @pl.when(i == pl.num_programs(0) - 1)
    def _finalize():
        g = g_acc[...]
        off_diag = jnp.sum(g * g) - s_acc[1]
        out_ref[0, 0] = s_acc[0] + LAMBDA_ * off_diag


def _pick_tile_n(n, d, itemsize):
    """Largest 8-aligned row tile fitting the VMEM plan (few, big grid steps)."""
    gram_bytes = 4 * d * d
    # Per-row VMEM: double-buffered input block + f32 + bf16 working copies.
    per_row = d * (2 * itemsize + 4 + 2) + 64
    avail = _VMEM_PLAN_BYTES - gram_bytes - (2 << 20)          # 2 MiB headroom
    tile = max(8, min(avail // per_row, 4096, (n // 8) * 8))
    return (int(tile) // 8) * 8


def _mfi_loss_tiled(t_prime, *, tile_n=None):
    n, d = t_prime.shape
    itemsize = jnp.dtype(t_prime.dtype).itemsize
    if tile_n is None:
        tile_n = _pick_tile_n(n, d, itemsize)
    tile_n = max(8, min((int(tile_n) // 8) * 8, (n // 8) * 8))
    grid = pl.cdiv(n, tile_n)   # no jnp.pad: tail rows are masked in-kernel

    kernel = functools.partial(_mfi_loss_tiled_kernel, n, tile_n)
    out = pl.pallas_call(
        kernel,
        out_shape=jax.ShapeDtypeStruct((1, 1), jnp.float32),
        grid_spec=pltpu.PrefetchScalarGridSpec(
            num_scalar_prefetch=0,
            grid=(grid,),
            in_specs=[pl.BlockSpec((tile_n, d), lambda i: (i, 0))],
            out_specs=pl.BlockSpec(memory_space=pltpu.SMEM),
            scratch_shapes=[
                pltpu.VMEM((d, d), jnp.float32),   # Gram accumulator
                pltpu.SMEM((2,), jnp.float32),     # [collapse, diag^2] partials
            ],
        ),
        compiler_params=pltpu.CompilerParams(
            dimension_semantics=("arbitrary",),
            vmem_limit_bytes=_VMEM_LIMIT_BYTES),
    )(t_prime)
    return out[0, 0]


def mfi_loss(t_prime, *, tile_n=None):
    """t_prime: (N, D) array. Returns scalar f32 loss (collapse + 0.2*off_diag)."""
    n, d = t_prime.shape
    itemsize = jnp.dtype(t_prime.dtype).itemsize
    # VMEM-byte-aware dispatch: single-tile path when input + f32/bf16 working
    # copies + the min-side Gram fit comfortably on every generation (v7x incl.).
    small_bytes = n * d * (itemsize + 4 + 2) + 2 * 4 * min(n, d) ** 2
    if small_bytes <= _SMALL_PATH_BYTES or n < 8:
        # TODO(synk): an (N<8, enormous-D) input that also fails the byte check
        #             would need a D-chunked row-norm pass; not handled here.
        return _mfi_loss_small(t_prime)
    return _mfi_loss_tiled(t_prime, tile_n=tile_n)


# --------------------------------------------------------------------------
# Pure-JAX reference (mirrors the PyTorch module) for validation.
# --------------------------------------------------------------------------
def mfi_loss_ref(t_prime):
    t = t_prime.astype(jnp.float32)
    norm = jnp.maximum(jnp.linalg.norm(t, axis=-1, keepdims=True), EPS)
    tn = t / norm
    s = tn @ tn.T
    diag = jnp.diagonal(s)
    collapse = jnp.sum((diag - 1.0) ** 2)
    off_diag = jnp.sum(s ** 2) - jnp.sum(diag ** 2)
    return collapse + LAMBDA_ * off_diag


if __name__ == "__main__":
    key = jax.random.PRNGKey(0)
    k1, k2, k3, k4 = jax.random.split(key, 4)

    # bf16 MXU inputs (f32 accumulation) -> compare at ~1% tolerance.
    RTOL, ATOL = 1e-2, 1e-2

    # 1) Production-like tiny shape: single-tile path, N <= D (S = Tn Tn^T).
    t1 = jax.random.normal(k1, (8, 32), dtype=jnp.float32)
    got = jax.block_until_ready(mfi_loss(t1))
    ref = mfi_loss_ref(t1)
    assert jnp.allclose(got, ref, rtol=RTOL, atol=ATOL), (got, ref)

    # 2) N > D: single-tile path with the (D, D) Gram orientation.
    t2 = jax.random.normal(k2, (64, 32), dtype=jnp.float32)
    got = jax.block_until_ready(mfi_loss(t2))
    ref = mfi_loss_ref(t2)
    assert jnp.allclose(got, ref, rtol=RTOL, atol=ATOL), (got, ref)

    # 3) Tiled path with a ragged tail (300 = 2*128 + 44): exercises the
    #    in-kernel tail masking (no jnp.pad) and the init/finalize pl.when.
    t3 = jax.random.normal(k3, (300, 32), dtype=jnp.float32)
    got = jax.block_until_ready(_mfi_loss_tiled(t3, tile_n=128))
    ref = mfi_loss_ref(t3)
    assert jnp.allclose(got, ref, rtol=RTOL, atol=ATOL), (got, ref)

    # 4) Dispatcher-selected tiled path with automatic (large) tile sizing.
    t4 = jax.random.normal(k4, (2048, 256), dtype=jnp.float32)
    got = jax.block_until_ready(mfi_loss(t4))
    ref = mfi_loss_ref(t4)
    assert jnp.allclose(got, ref, rtol=RTOL, atol=ATOL), (got, ref)

    print("KERNEL_OK")
</pallas_src>

<mosaic_0001>
module attributes {stable_mosaic.version = 11 : i64} {
  func.func @_mfi_loss_small_kernel(%arg0: memref<8x32xf32, #tpu.memory_space<vmem>>, %arg1: memref<1x1xf32, #tpu.memory_space<smem>>) attributes {dimension_semantics = [], scalar_prefetch = 0 : i64, scratch_operands = 0 : i64, tpu.core_type = #tpu.core_type<tc>} {
    %c0 = arith.constant 0 : index
    %c0_0 = arith.constant 0 : index
    %0 = vector.load %arg0[%c0, %c0_0] : memref<8x32xf32, #tpu.memory_space<vmem>>, vector<8x32xf32>
    %1 = arith.mulf %0, %0 : vector<8x32xf32>
    %cst = arith.constant dense<0.000000e+00> : vector<8xf32>
    %2 = vector.multi_reduction <add>, %1, %cst [1] : vector<8x32xf32> to vector<8xf32>
    %3 = vector.shape_cast %2 : vector<8xf32> to vector<8x1xf32>
    %cst_1 = arith.constant 1.000000e-24 : f32
    %4 = vector.broadcast %cst_1 : f32 to vector<8x1xf32>
    %5 = arith.maximumf %3, %4 : vector<8x1xf32>
    %6 = math.rsqrt %5 : vector<8x1xf32>
    %7 = vector.broadcast %6 : vector<8x1xf32> to vector<8x32xf32>
    %8 = arith.mulf %0, %7 : vector<8x32xf32>
    %9 = arith.truncf %8 : vector<8x32xf32> to vector<8x32xbf16>
    %10 = arith.mulf %6, %6 : vector<8x1xf32>
    %11 = arith.mulf %3, %10 : vector<8x1xf32>
    %cst_2 = arith.constant 1.000000e+00 : f32
    %12 = vector.broadcast %cst_2 : f32 to vector<8x1xf32>
    %13 = arith.subf %11, %12 : vector<8x1xf32>
    %14 = arith.mulf %13, %13 : vector<8x1xf32>
    %15 = vector.shape_cast %14 : vector<8x1xf32> to vector<1x8x1xf32>
    %cst_3 = arith.constant dense<0.000000e+00> : vector<1xf32>
    %16 = vector.multi_reduction <add>, %15, %cst_3 [1, 2] : vector<1x8x1xf32> to vector<1xf32>
    %17 = vector.shape_cast %16 : vector<1xf32> to vector<1x1x1xf32>
    %18 = vector.extract %17[0, 0, 0] : f32 from vector<1x1x1xf32>
    %19 = arith.mulf %11, %11 : vector<8x1xf32>
    %20 = vector.shape_cast %19 : vector<8x1xf32> to vector<1x8x1xf32>
    %cst_4 = arith.constant dense<0.000000e+00> : vector<1xf32>
    %21 = vector.multi_reduction <add>, %20, %cst_4 [1, 2] : vector<1x8x1xf32> to vector<1xf32>
    %22 = vector.shape_cast %21 : vector<1xf32> to vector<1x1x1xf32>
    %23 = vector.extract %22[0, 0, 0] : f32 from vector<1x1x1xf32>
    %cst_5 = arith.constant dense<0.000000e+00> : vector<8x8xf32>
    %24 = tpu.matmul %9, %9, %cst_5 {dimension_numbers = #tpu.dot_dimension_numbers<[1], [1], [0], [0], [0, 0, 1, 0], [], []>} : vector<8x32xbf16>, vector<8x32xbf16>, vector<8x8xf32> -> vector<8x8xf32>
    %25 = arith.mulf %24, %24 : vector<8x8xf32>
    %26 = vector.shape_cast %25 : vector<8x8xf32> to vector<1x8x8xf32>
    %cst_6 = arith.constant dense<0.000000e+00> : vector<1xf32>
    %27 = vector.multi_reduction <add>, %26, %cst_6 [1, 2] : vector<1x8x8xf32> to vector<1xf32>
    %28 = vector.shape_cast %27 : vector<1xf32> to vector<1x1x1xf32>
    %29 = vector.extract %28[0, 0, 0] : f32 from vector<1x1x1xf32>
    %30 = arith.subf %29, %23 : f32
    %cst_7 = arith.constant 2.000000e-01 : f32
    %31 = arith.mulf %cst_7, %30 : f32
    %32 = arith.addf %18, %31 : f32
    %c0_8 = arith.constant 0 : index
    %c0_9 = arith.constant 0 : index
    %33 = memref.load %arg1[%c0_8, %c0_9] : memref<1x1xf32, #tpu.memory_space<smem>>
    memref.store %32, %arg1[%c0_8, %c0_9] : memref<1x1xf32, #tpu.memory_space<smem>>
    return
  }
}

</mosaic_0001>

<bundles_post_ra>
// kernel: tpu_custom_call.1
= control target key start
LH: loop header
LB: loop body
LE: loop exit
PB: predicated region body
PF: predicated region fallthrough
CT: control target
= control target key end

     0   :  { %6 = vsyncpa [#allocation3], 0  ;;  %s231_s0 = inlined_call_operand.hbm [shape: f32[8,32], index: 0, kind: input, shape index: {}]   ;;  %s232_s1 = inlined_call_operand.hbm [shape: f32[1,1], index: 1, kind: output, shape index: {}]  }
   0x1   :  { %7 = vsyncpa [#allocation4], 0  ;;  %s190_s6 = smov [#allocation2]   ;;  %s154_s10 = scalar_lea.hbm %s231_s0, 128 }
   0x2   :  { %s14_s7 = sshll.u32 %s190_s6, 4  ;;  %p155_p0 = scmp.ne.s32.totalorder %s231_s0, %s154_s10  ;;  %s15_s7 = int_to_ptr.vmem [resolvable:$true] %s14_s7 }
   0x3   :  { %p158_p1 = scmp.lt.u32.totalorder %s154_s10, %s231_s0 }
   0x5   :  { %p160_p2 = pnand %p158_p1, %p155_p0 }
   0x7   :  { %163 = shalt.err (!%p160_p2)
}
   0x8   :  { %s164_s15 = scalar_lea.vmem %s15_s7, 128  ;;  %p169_p4 = scmp.lt.s32.totalorder %s15_s7, %s15_s7 }
   0x9   :  { %p165_p3 = scmp.ne.s32.totalorder %s15_s7, %s164_s15  ;;  %p170_p5 = scmp.lt.s32.totalorder %s164_s15, %s164_s15 }
   0xb   :  { %p171_p6 = por %p170_p5, %p169_p4 }
   0xd   :  { %p172_p7 = pnand %p171_p6, %p165_p3 }
   0xf   :  { %175 = shalt.err (!%p172_p7)
}
  0x10   :  { %17 = dma.hbm_to_vmem [thread:$0]  %s231_s0, 128, %s15_s7, [#allocation3]  }
  0x11   :  { %186 = dma.done.wait [#allocation3], 128  }
  0x12   :  { %187 = vsyncadd [#allocation3], 4294967168  ;;  %v22_v0 = vld [vmem:[#allocation2] sm:$0xff]  ;;  %vm24_vm0 = vcmask 261120   ;;  %v191_v3 = vmov 0.0   ;;  %vm192_vm1 = vmmov 0  }
  0x13   :  { %v23_v1 = vmul.f32 %v22_v0, %v22_v0  ;;  %136 = vmatprep.subr.bf16.mxu0 %v191_v3  ;;  %138 = vmatprep.mubr.msk.bf16.mxu0 %vm192_vm1, %v191_v3  ;;  %vm36_vm2 = vcmask 7168   ;;  %vm102_vm3 = vcmask 64512   ;;  %s176_s25 = scalar_lea.hbm %s232_s1, 16 }
  0x14   :  { %p177_p8 = scmp.ne.s32.totalorder %s232_s1, %s176_s25  ;;  %p180_p9 = scmp.lt.u32.totalorder %s176_s25, %s232_s1 }
  0x15   :  { %v25_v2 = vsel %vm24_vm0, %v23_v1, 0.0 }
  0x16   :  { %26 = vadd.xlane.f32.xlu0 %v25_v2  ;;  %p182_p10 = pnand %p180_p9, %p177_p8 }
  0xa3   :  { %v27_v4 = vpop.xlane.xlu0 %26 }
  0xa4   :  { %v28_v5 = vmax.f32 %v27_v4, 1e-24 }
  0xa6   :  { %152 = vrsqrt.f32 %v28_v5 }
  0xb0   :  { %v153_v6 = vpop.eup %152 }
  0xb1   :  { %v32_v7 = vmul.f32 %v153_v6, %v153_v6  ;;  %v30_v8 = vmul.f32 %v153_v6, %v22_v0 }
  0xb3   :  { %v33_v9 = vmul.f32 %v32_v7, %v27_v4  ;;  %v31_v10 = vpack.c.bf16 %v30_v8, %v30_v8 }
  0xb5   :  { %v59_v11 = vsel %vm24_vm0, %v31_v10, 0  ;;  %v47_v12 = vmul.f32 %v33_v9, %v33_v9  ;;  %v132_v13 = vadd.f32 -1.0, %v33_v9 }
  0xb6   :  { %137 = vmatpush3.bf16.xpose.msra.mxu0 %v59_v11 }
  0xb7   :  { %v48_v14 = vsel %vm36_vm2, %v47_v12, 0.0  ;;  %v35_v15 = vmul.f32 %v132_v13, %v132_v13 }
  0xb8   :  { %49 = vadd.xlane.f32.xlu1 %v48_v14 }
  0xb9   :  { %v37_v16 = vsel %vm36_vm2, %v35_v15, 0.0 }
  0xba   :  { %38 = vadd.xlane.f32.xlu0 %v37_v16 }
  0xbd   :  { %139 = vmatmul.mubr.msk.bf16.vlgmr.msra.gmra.mrb[0].mxu0 %vm24_vm0, %v31_v10 }
 0x145   :  { %v50_v17 = vpop.xlane.xlu1 %49 }
 0x146   :  { %v51_v18 = vrot.slane %v50_v17, 4 }
 0x147   :  { %v39_v19 = vpop.xlane.xlu0 %38 }
 0x148   :  { %v52_v20 = vadd.f32 %v51_v18, %v50_v17  ;;  %v40_v21 = vrot.slane %v39_v19, 4 }
 0x14a   :  { %v53_v22 = vrot.slane %v52_v20, 2  ;;  %v41_v23 = vadd.f32 %v40_v21, %v39_v19 }
 0x14c   :  { %v42_v24 = vrot.slane %v41_v23, 2  ;;  %v54_v25 = vadd.f32 %v53_v22, %v52_v20 }
 0x14e   :  { %v43_v26 = vadd.f32 %v42_v24, %v41_v23  ;;  %v55_v27 = vrot.slane %v54_v25, 1 }
 0x150   :  { %v44_v28 = vrot.slane %v43_v26, 1  ;;  %v56_v30 = vadd.f32 %v55_v27, %v54_v25 }
 0x152   :  { %v45_v29 = vadd.f32 %v44_v28, %v43_v26 }
 0x154   :  { %142 = vpush %v45_v29 }
 0x155   :  { %144 = vpush %v56_v30 }
 0x185   :  { %s143_s0 = spop %142 }
 0x186   :  { %s145_s18 = spop %144 }
 0x190   :  { %v95_v31 = vpop.f32.mrb[0].mxu0 }
 0x191   :  { %v101_v32 = vmul.f32 %v95_v31, %v95_v31  ;;  %v140_v33 = vpop.f32.mrb[1].mxu0 }
 0x192   :  { %v98_v34 = vpop.f32.mrb[2].mxu0 }
 0x193   :  { %v141_v35 = vpop.f32.mrb[3].mxu0  ;;  %v103_v36 = vsel %vm102_vm3, %v101_v32, 0.0 }
 0x194   :  { %104 = vadd.xlane.f32.xlu1 %v103_v36 }
 0x221   :  { %v105_v37 = vpop.xlane.xlu1 %104 }
 0x222   :  { %v106_v38 = vrot.slane %v105_v37, 4 }
 0x224   :  { %v107_v39 = vadd.f32 %v106_v38, %v105_v37 }
 0x226   :  { %v108_v40 = vrot.slane %v107_v39, 2 }
 0x228   :  { %v109_v41 = vadd.f32 %v108_v40, %v107_v39 }
 0x22a   :  { %v110_v42 = vrot.slane %v109_v41, 1 }
 0x22c   :  { %v111_v43 = vadd.f32 %v110_v42, %v109_v41 }
 0x22e   :  { %146 = vpush %v111_v43 }
 0x25f   :  { %s147_s19 = spop %146 }
 0x260   :  { %s113_s20 = ssub.f32 %s147_s19, %s145_s18 }
 0x262   :  { %s114_s21 = smul.f32 0.2, %s113_s20 }
 0x264   :  { %s115_s22 = sadd.f32 %s143_s0, %s114_s21 }
 0x266   :  { %117 = sst [smem:[#allocation5]] %s115_s22 }
 0x267   :  { %185 = shalt.err (!%p182_p10)
}
 0x268   :  { %s193_s30 = smov [#allocation5]  }
 0x269   :  { %125 = dma.smem_to_hbm %s193_s30, 16, %s232_s1, [#allocation4]  }
 0x26a   :  { %188 = dma.done.wait [#allocation4], 16  }
 0x26b   :  { %189 = vsyncadd [#allocation4], 4294967280 }
 0x26c   :  { %129 = sfence }
 0x26d   :  { %130 = vsyncpa [#allocation3], 1 }
 0x26e   :  { %131 = vsyncpa [#allocation4], 1 }

</bundles_post_ra>
